<compile_context>
chip_gen: v5e
topology: v5e:2x2
jax: 0.10.0
libtpu: 0.0.40
codegen_flags: <defaults>
</compile_context>

<pallas_src>
import functools

import jax
import jax.numpy as jnp
from jax.experimental import pallas as pl
from jax.experimental.pallas import tpu as pltpu


def _dwsep_kernel(*refs, H, W, KH, KW, pad, cg, bsz, fold_bias, bias_row):
    # refs (fold_bias=True ): x_ref, w_ref, m_ref, o_ref, patch_ref
    # refs (fold_bias=False): x_ref, w_ref, m_ref, b_ref, o_ref, patch_ref
    if fold_bias:
        x_ref, w_ref, m_ref, o_ref, patch_ref = refs
        b_ref = None
    else:
        x_ref, w_ref, m_ref, b_ref, o_ref, patch_ref = refs

    HW = H * W

    # --- im2col build: B images side-by-side on the lane axis ----------------
    for b in range(bsz):
        xf = x_ref[b]                          # (Cg, HW); channels >= Cin are zero
        lane0 = b * HW
        for kh in range(KH):
            for kw in range(KW):
                t = kh * KW + kw
                dh = kh - pad
                dw = kw - pad
                s = dh * W + dw                # flat source offset of this tap
                if s == 0:
                    tap = xf                   # center tap: boundary mask is all ones
                else:
                    shifted = pltpu.roll(xf, (-s) % HW, axis=1)   # XLU lane roll
                    tap = shifted * m_ref[pl.ds(t, 1), :]         # Conv2d zero padding
                # Full (Cg, HW) sublane-tile store; (Cg-Cin) pad rows rewritten as zeros.
                patch_ref[pl.ds(t * cg, cg), pl.ds(lane0, HW)] = tap

    if fold_bias:
        # Constant-1 row feeding the bias column of the fused weight matrix.
        patch_ref[pl.ds(bias_row, 1), :] = jnp.ones((1, bsz * HW),
                                                    dtype=patch_ref.dtype)

    # --- single fused MXU matmul: (Cout, K) @ (K, B*HW) ----------------------
    out = jnp.dot(w_ref[...], patch_ref[...],
                  preferred_element_type=jnp.float32)             # (Cout, B*HW) f32
    if not fold_bias:
        out = out + b_ref[...]                                    # f32 bias add

    # Per-image lane slices land on multiples of HW (>=128 here) -> unmasked stores.
    for b in range(bsz):
        o_ref[b] = out[:, b * HW:(b + 1) * HW].astype(o_ref.dtype)


def _sublane_tile(dtype):
    return {4: 8, 2: 16, 1: 32}.get(jnp.dtype(dtype).itemsize, 8)


def _pick_batch_per_step(n, bmax):
    """Largest divisor of n that fits the VMEM budget and still leaves >=2
    'parallel' grid steps when n >= 2 (so both v7x TensorCores get work)."""
    if n <= 1:
        return 1
    cap = max(1, min(bmax, n // 2))
    best = 1
    for d in range(1, cap + 1):
        if n % d == 0:
            best = d
    return best


def depthwise_separable_conv(x_nchw, dw_w, dw_b, pw_w, pw_b, *, stride=1,
                             padding=1, batch_per_step=None):
    """x_nchw: (N, Cin, H, W).  PyTorch Conv2d parameter layouts:
       dw_w: (Cin, 1, KH, KW), dw_b: (Cin,), pw_w: (Cout, Cin, 1, 1), pw_b: (Cout,)."""
    N, Cin, H, W = x_nchw.shape
    Cout = pw_w.shape[0]
    KH, KW = dw_w.shape[2], dw_w.shape[3]

    if stride != 1 or 2 * padding != KH - 1 or 2 * padding != KW - 1:
        # TODO(synk): general stride / non-'same' padding changes the output spatial
        # size; that needs a strided im2col + different output BlockSpec.
        raise ValueError("only stride=1 'same' convolutions are supported "
                         f"(got stride={stride}, padding={padding}, kernel={KH}x{KW})")

    HW = H * W
    taps = KH * KW
    dtype = x_nchw.dtype
    isz = jnp.dtype(dtype).itemsize
    sub = _sublane_tile(dtype)                 # dtype-native sublane tile
    Cg = ((Cin + sub - 1) // sub) * sub
    Ktot = taps * Cg

    # Fold bias into a spare zero pad row only when that row exists and weights stay
    # f32 (never round the bias to a narrower storage dtype).
    fold_bias = (Cg > Cin) and (dtype == jnp.float32)
    bias_row = (taps - 1) * Cg + Cin if fold_bias else -1

    # Free row-major reshape; channel pad only when Cin is not sublane-aligned.
    x_flat = x_nchw.reshape(N, Cin, HW)
    if Cg > Cin:
        x_flat = jnp.pad(x_flat, ((0, 0), (0, Cg - Cin), (0, 0)))

    # Fused depthwise*pointwise weights & bias, built in f32, downcast once.
    dwf = dw_w[:, 0].reshape(Cin, taps).astype(jnp.float32)        # (Cin, taps)
    pwf = pw_w[:, :, 0, 0].astype(jnp.float32)                     # (Cout, Cin)
    fused = pwf[:, None, :] * dwf.T[None, :, :]                    # (Cout, taps, Cin)
    w_full = jnp.zeros((Cout, taps, Cg), jnp.float32)
    w_full = w_full.at[:, :, :Cin].set(fused).reshape(Cout, Ktot)
    b_fused = pwf @ dw_b.astype(jnp.float32) + pw_b.astype(jnp.float32)   # (Cout,) f32
    if fold_bias:
        w_full = w_full.at[:, bias_row].set(b_fused)
    w_fused = w_full.astype(dtype)

    # Static {0,1} boundary masks implementing Conv2d zero padding, one row per tap.
    # TODO(synk): at large HW (v7x VMEM pressure) generate these in-kernel from
    # broadcasted_iota compares instead of streaming a (taps, HW) array; for bf16
    # inputs on v5e keep them f32 (no bf16 VALU there).
    ii = jnp.arange(H)
    jj = jnp.arange(W)
    mask_rows = []
    for kh in range(KH):
        for kw in range(KW):
            dh, dw_ = kh - padding, kw - padding
            mrow = (ii + dh >= 0) & (ii + dh < H)
            mcol = (jj + dw_ >= 0) & (jj + dw_ < W)
            mask_rows.append((mrow[:, None] & mcol[None, :]).reshape(HW))
    masks = jnp.stack(mask_rows, axis=0).astype(dtype)             # (taps, HW)

    # Batch folding: B images per grid step along the lane axis.
    if batch_per_step is None:
        per_img_bytes = (Ktot + 2 * Cg + 2 * Cout) * HW * isz
        bmax = max(1, (8 << 20) // max(per_img_bytes, 1))
        B = _pick_batch_per_step(N, bmax)
    else:
        B = batch_per_step
        assert N % B == 0
    steps = N // B

    kernel = functools.partial(_dwsep_kernel, H=H, W=W, KH=KH, KW=KW,
                               pad=padding, cg=Cg, bsz=B,
                               fold_bias=fold_bias, bias_row=bias_row)

    in_specs = [
        pl.BlockSpec((B, Cg, HW), lambda n: (n, 0, 0)),
        pl.BlockSpec((Cout, Ktot), lambda n: (0, 0)),
        pl.BlockSpec((taps, HW), lambda n: (0, 0)),
    ]
    inputs = [x_flat, w_fused, masks]
    if not fold_bias:
        in_specs.append(pl.BlockSpec((Cout, 1), lambda n: (0, 0)))
        inputs.append(b_fused.reshape(Cout, 1))                    # stays f32

    cost = pl.CostEstimate(
        flops=2 * N * Cout * Ktot * HW,
        transcendentals=0,
        bytes_accessed=(N * Cg * HW + Cout * Ktot + taps * HW + N * Cout * HW) * isz
                       + Cout * 4)

    # TODO(synk): for large images / channels add a second "parallel" grid axis over row
    # tiles with a (KH-1)-row halo and raise pltpu.CompilerParams(vmem_limit_bytes=...):
    # the (Ktot, B*HW) scratch must stay inside v7x's 64 MiB (32 MiB default-scoped)
    # VMEM and per-tap temporaries within ~32 live vregs.  Whole-image blocks are fine
    # at these sizes.
    out_flat = pl.pallas_call(
        kernel,
        out_shape=jax.ShapeDtypeStruct((N, Cout, HW), dtype),
        grid_spec=pltpu.PrefetchScalarGridSpec(
            num_scalar_prefetch=0,
            grid=(steps,),
            in_specs=in_specs,
            out_specs=pl.BlockSpec((B, Cout, HW), lambda n: (n, 0, 0)),
            scratch_shapes=[pltpu.VMEM((Ktot, B * HW), dtype)],
        ),
        compiler_params=pltpu.CompilerParams(
            dimension_semantics=("parallel",)),
        cost_estimate=cost,
    )(*inputs)

    return out_flat.reshape(N, Cout, H, W)    # free reshape back to NCHW


def _reference(x_nchw, dw_w, dw_b, pw_w, pw_b, *, padding=1):
    """Pure-JAX reference matching nn.Conv2d semantics (for self-check)."""
    dn = jax.lax.conv_dimension_numbers(x_nchw.shape, dw_w.shape,
                                        ("NCHW", "OIHW", "NCHW"))
    y = jax.lax.conv_general_dilated(
        x_nchw, dw_w, window_strides=(1, 1),
        padding=[(padding, padding), (padding, padding)],
        dimension_numbers=dn, feature_group_count=x_nchw.shape[1])
    y = y + dw_b[None, :, None, None]
    z = jax.lax.conv_general_dilated(
        y, pw_w, window_strides=(1, 1), padding=[(0, 0), (0, 0)],
        dimension_numbers=dn)
    return z + pw_b[None, :, None, None]


if __name__ == "__main__":
    def run_case(N, Cin, Cout, H, W, K, pad):
        key = jax.random.PRNGKey(0)
        kx, kdw, kdb, kpw, kpb = jax.random.split(key, 5)
        x = jax.random.normal(kx, (N, Cin, H, W), dtype=jnp.float32)
        dw_w = jax.random.normal(kdw, (Cin, 1, K, K), dtype=jnp.float32) * 0.1
        dw_b = jax.random.normal(kdb, (Cin,), dtype=jnp.float32) * 0.1
        pw_w = jax.random.normal(kpw, (Cout, Cin, 1, 1), dtype=jnp.float32) * 0.1
        pw_b = jax.random.normal(kpb, (Cout,), dtype=jnp.float32) * 0.1
        out = depthwise_separable_conv(x, dw_w, dw_b, pw_w, pw_b, padding=pad)
        out = jax.block_until_ready(out)
        ref = _reference(x, dw_w, dw_b, pw_w, pw_b, padding=pad)
        assert out.shape == (N, Cout, H, W), out.shape
        err = float(jnp.max(jnp.abs(out - ref)))
        assert jnp.allclose(out, ref, atol=1e-5, rtol=1e-5), err

    # Batch folded 2-per-step (bias folded into a spare K row), 2 parallel grid steps.
    run_case(4, 4, 8, 16, 16, 3, 1)
    # Module-default small shapes; B=1, grid=(2,).
    run_case(2, 4, 8, 16, 16, 3, 1)
    # Sublane-aligned Cin (no channel pad; separate f32 bias-add path).
    run_case(2, 8, 16, 16, 16, 3, 1)

    print("KERNEL_OK")
</pallas_src>

<mosaic_0001>
module attributes {stable_mosaic.version = 11 : i64} {
  func.func @_dwsep_kernel(%arg0: i32, %arg1: memref<2x8x256xf32, #tpu.memory_space<vmem>>, %arg2: memref<8x72xf32, #tpu.memory_space<vmem>>, %arg3: memref<9x256xf32, #tpu.memory_space<vmem>>, %arg4: memref<2x8x256xf32, #tpu.memory_space<vmem>>, %arg5: memref<72x512xf32, #tpu.memory_space<vmem>>) attributes {dimension_semantics = [#tpu.dimension_semantics<parallel>], iteration_bounds = array<i64: 2>, scalar_prefetch = 0 : i64, scratch_operands = 1 : i64, tpu.core_type = #tpu.core_type<tc>, window_params = [{transform_indices = @transform_0, window_bounds = array<i64: 2, 8, 256>}, {pipeline_mode = #tpu.pipeline_mode<synchronous>, transform_indices = @transform_1, window_bounds = array<i64: 8, 72>}, {pipeline_mode = #tpu.pipeline_mode<synchronous>, transform_indices = @transform_2, window_bounds = array<i64: 9, 256>}, {transform_indices = @transform_3, window_bounds = array<i64: 2, 8, 256>}]} {
    %c0 = arith.constant 0 : index
    %c0_0 = arith.constant 0 : index
    %c0_1 = arith.constant 0 : index
    %0 = vector.load %arg1[%c0, %c0_0, %c0_1] : memref<2x8x256xf32, #tpu.memory_space<vmem>>, vector<1x8x256xf32>
    %1 = vector.shape_cast %0 : vector<1x8x256xf32> to vector<8x256xf32>
    %c17_i32 = arith.constant 17 : i32
    %2 = tpu.dynamic_rotate %1 by %c17_i32 dim 1 : vector<8x256xf32>, i32 -> vector<8x256xf32>
    %c0_2 = arith.constant 0 : index
    %c0_3 = arith.constant 0 : index
    %3 = vector.load %arg3[%c0_2, %c0_3] : memref<9x256xf32, #tpu.memory_space<vmem>>, vector<1x256xf32>
    %4 = vector.broadcast %3 : vector<1x256xf32> to vector<8x256xf32>
    %5 = arith.mulf %2, %4 : vector<8x256xf32>
    %c0_4 = arith.constant 0 : index
    %c0_5 = arith.constant 0 : index
    %6 = vector.load %arg5[%c0_4, %c0_5] : memref<72x512xf32, #tpu.memory_space<vmem>>, vector<8x256xf32>
    tpu.vector_store %arg5[%c0_4, %c0_5], %5 {strides = array<i32>} : memref<72x512xf32, #tpu.memory_space<vmem>>, vector<8x256xf32>,
    %c16_i32 = arith.constant 16 : i32
    %7 = tpu.dynamic_rotate %1 by %c16_i32 dim 1 : vector<8x256xf32>, i32 -> vector<8x256xf32>
    %c1 = arith.constant 1 : index
    %c0_6 = arith.constant 0 : index
    %8 = vector.load %arg3[%c1, %c0_6] : memref<9x256xf32, #tpu.memory_space<vmem>>, vector<1x256xf32>
    %9 = vector.broadcast %8 : vector<1x256xf32> to vector<8x256xf32>
    %10 = arith.mulf %7, %9 : vector<8x256xf32>
    %c8 = arith.constant 8 : index
    %c0_7 = arith.constant 0 : index
    %11 = vector.load %arg5[%c8, %c0_7] : memref<72x512xf32, #tpu.memory_space<vmem>>, vector<8x256xf32>
    tpu.vector_store %arg5[%c8, %c0_7], %10 {strides = array<i32>} : memref<72x512xf32, #tpu.memory_space<vmem>>, vector<8x256xf32>,
    %c15_i32 = arith.constant 15 : i32
    %12 = tpu.dynamic_rotate %1 by %c15_i32 dim 1 : vector<8x256xf32>, i32 -> vector<8x256xf32>
    %c2 = arith.constant 2 : index
    %c0_8 = arith.constant 0 : index
    %13 = vector.load %arg3[%c2, %c0_8] : memref<9x256xf32, #tpu.memory_space<vmem>>, vector<1x256xf32>
    %14 = vector.broadcast %13 : vector<1x256xf32> to vector<8x256xf32>
    %15 = arith.mulf %12, %14 : vector<8x256xf32>
    %c16 = arith.constant 16 : index
    %c0_9 = arith.constant 0 : index
    %16 = vector.load %arg5[%c16, %c0_9] : memref<72x512xf32, #tpu.memory_space<vmem>>, vector<8x256xf32>
    tpu.vector_store %arg5[%c16, %c0_9], %15 {strides = array<i32>} : memref<72x512xf32, #tpu.memory_space<vmem>>, vector<8x256xf32>,
    %c1_i32 = arith.constant 1 : i32
    %17 = tpu.dynamic_rotate %1 by %c1_i32 dim 1 : vector<8x256xf32>, i32 -> vector<8x256xf32>
    %c3 = arith.constant 3 : index
    %c0_10 = arith.constant 0 : index
    %18 = vector.load %arg3[%c3, %c0_10] : memref<9x256xf32, #tpu.memory_space<vmem>>, vector<1x256xf32>
    %19 = vector.broadcast %18 : vector<1x256xf32> to vector<8x256xf32>
    %20 = arith.mulf %17, %19 : vector<8x256xf32>
    %c24 = arith.constant 24 : index
    %c0_11 = arith.constant 0 : index
    %21 = vector.load %arg5[%c24, %c0_11] : memref<72x512xf32, #tpu.memory_space<vmem>>, vector<8x256xf32>
    tpu.vector_store %arg5[%c24, %c0_11], %20 {strides = array<i32>} : memref<72x512xf32, #tpu.memory_space<vmem>>, vector<8x256xf32>,
    %c32 = arith.constant 32 : index
    %c0_12 = arith.constant 0 : index
    %22 = vector.load %arg5[%c32, %c0_12] : memref<72x512xf32, #tpu.memory_space<vmem>>, vector<8x256xf32>
    tpu.vector_store %arg5[%c32, %c0_12], %1 {strides = array<i32>} : memref<72x512xf32, #tpu.memory_space<vmem>>, vector<8x256xf32>,
    %c255_i32 = arith.constant 255 : i32
    %23 = tpu.dynamic_rotate %1 by %c255_i32 dim 1 : vector<8x256xf32>, i32 -> vector<8x256xf32>
    %c5 = arith.constant 5 : index
    %c0_13 = arith.constant 0 : index
    %24 = vector.load %arg3[%c5, %c0_13] : memref<9x256xf32, #tpu.memory_space<vmem>>, vector<1x256xf32>
    %25 = vector.broadcast %24 : vector<1x256xf32> to vector<8x256xf32>
    %26 = arith.mulf %23, %25 : vector<8x256xf32>
    %c40 = arith.constant 40 : index
    %c0_14 = arith.constant 0 : index
    %27 = vector.load %arg5[%c40, %c0_14] : memref<72x512xf32, #tpu.memory_space<vmem>>, vector<8x256xf32>
    tpu.vector_store %arg5[%c40, %c0_14], %26 {strides = array<i32>} : memref<72x512xf32, #tpu.memory_space<vmem>>, vector<8x256xf32>,
    %c241_i32 = arith.constant 241 : i32
    %28 = tpu.dynamic_rotate %1 by %c241_i32 dim 1 : vector<8x256xf32>, i32 -> vector<8x256xf32>
    %c6 = arith.constant 6 : index
    %c0_15 = arith.constant 0 : index
    %29 = vector.load %arg3[%c6, %c0_15] : memref<9x256xf32, #tpu.memory_space<vmem>>, vector<1x256xf32>
    %30 = vector.broadcast %29 : vector<1x256xf32> to vector<8x256xf32>
    %31 = arith.mulf %28, %30 : vector<8x256xf32>
    %c48 = arith.constant 48 : index
    %c0_16 = arith.constant 0 : index
    %32 = vector.load %arg5[%c48, %c0_16] : memref<72x512xf32, #tpu.memory_space<vmem>>, vector<8x256xf32>
    tpu.vector_store %arg5[%c48, %c0_16], %31 {strides = array<i32>} : memref<72x512xf32, #tpu.memory_space<vmem>>, vector<8x256xf32>,
    %c240_i32 = arith.constant 240 : i32
    %33 = tpu.dynamic_rotate %1 by %c240_i32 dim 1 : vector<8x256xf32>, i32 -> vector<8x256xf32>
    %c7 = arith.constant 7 : index
    %c0_17 = arith.constant 0 : index
    %34 = vector.load %arg3[%c7, %c0_17] : memref<9x256xf32, #tpu.memory_space<vmem>>, vector<1x256xf32>
    %35 = vector.broadcast %34 : vector<1x256xf32> to vector<8x256xf32>
    %36 = arith.mulf %33, %35 : vector<8x256xf32>
    %c56 = arith.constant 56 : index
    %c0_18 = arith.constant 0 : index
    %37 = vector.load %arg5[%c56, %c0_18] : memref<72x512xf32, #tpu.memory_space<vmem>>, vector<8x256xf32>
    tpu.vector_store %arg5[%c56, %c0_18], %36 {strides = array<i32>} : memref<72x512xf32, #tpu.memory_space<vmem>>, vector<8x256xf32>,
    %c239_i32 = arith.constant 239 : i32
    %38 = tpu.dynamic_rotate %1 by %c239_i32 dim 1 : vector<8x256xf32>, i32 -> vector<8x256xf32>
    %c8_19 = arith.constant 8 : index
    %c0_20 = arith.constant 0 : index
    %39 = vector.load %arg3[%c8_19, %c0_20] : memref<9x256xf32, #tpu.memory_space<vmem>>, vector<1x256xf32>
    %40 = vector.broadcast %39 : vector<1x256xf32> to vector<8x256xf32>
    %41 = arith.mulf %38, %40 : vector<8x256xf32>
    %c64 = arith.constant 64 : index
    %c0_21 = arith.constant 0 : index
    %42 = vector.load %arg5[%c64, %c0_21] : memref<72x512xf32, #tpu.memory_space<vmem>>, vector<8x256xf32>
    tpu.vector_store %arg5[%c64, %c0_21], %41 {strides = array<i32>} : memref<72x512xf32, #tpu.memory_space<vmem>>, vector<8x256xf32>,
    %c1_22 = arith.constant 1 : index
    %c0_23 = arith.constant 0 : index
    %c0_24 = arith.constant 0 : index
    %43 = vector.load %arg1[%c1_22, %c0_23, %c0_24] : memref<2x8x256xf32, #tpu.memory_space<vmem>>, vector<1x8x256xf32>
    %44 = vector.shape_cast %43 : vector<1x8x256xf32> to vector<8x256xf32>
    %c17_i32_25 = arith.constant 17 : i32
    %45 = tpu.dynamic_rotate %44 by %c17_i32_25 dim 1 : vector<8x256xf32>, i32 -> vector<8x256xf32>
    %c0_26 = arith.constant 0 : index
    %c0_27 = arith.constant 0 : index
    %46 = vector.load %arg3[%c0_26, %c0_27] : memref<9x256xf32, #tpu.memory_space<vmem>>, vector<1x256xf32>
    %47 = vector.broadcast %46 : vector<1x256xf32> to vector<8x256xf32>
    %48 = arith.mulf %45, %47 : vector<8x256xf32>
    %c0_28 = arith.constant 0 : index
    %c256 = arith.constant 256 : index
    %49 = vector.load %arg5[%c0_28, %c256] : memref<72x512xf32, #tpu.memory_space<vmem>>, vector<8x256xf32>
    tpu.vector_store %arg5[%c0_28, %c256], %48 {strides = array<i32>} : memref<72x512xf32, #tpu.memory_space<vmem>>, vector<8x256xf32>,
    %c16_i32_29 = arith.constant 16 : i32
    %50 = tpu.dynamic_rotate %44 by %c16_i32_29 dim 1 : vector<8x256xf32>, i32 -> vector<8x256xf32>
    %c1_30 = arith.constant 1 : index
    %c0_31 = arith.constant 0 : index
    %51 = vector.load %arg3[%c1_30, %c0_31] : memref<9x256xf32, #tpu.memory_space<vmem>>, vector<1x256xf32>
    %52 = vector.broadcast %51 : vector<1x256xf32> to vector<8x256xf32>
    %53 = arith.mulf %50, %52 : vector<8x256xf32>
    %c8_32 = arith.constant 8 : index
    %c256_33 = arith.constant 256 : index
    %54 = vector.load %arg5[%c8_32, %c256_33] : memref<72x512xf32, #tpu.memory_space<vmem>>, vector<8x256xf32>
    tpu.vector_store %arg5[%c8_32, %c256_33], %53 {strides = array<i32>} : memref<72x512xf32, #tpu.memory_space<vmem>>, vector<8x256xf32>,
    %c15_i32_34 = arith.constant 15 : i32
    %55 = tpu.dynamic_rotate %44 by %c15_i32_34 dim 1 : vector<8x256xf32>, i32 -> vector<8x256xf32>
    %c2_35 = arith.constant 2 : index
    %c0_36 = arith.constant 0 : index
    %56 = vector.load %arg3[%c2_35, %c0_36] : memref<9x256xf32, #tpu.memory_space<vmem>>, vector<1x256xf32>
    %57 = vector.broadcast %56 : vector<1x256xf32> to vector<8x256xf32>
    %58 = arith.mulf %55, %57 : vector<8x256xf32>
    %c16_37 = arith.constant 16 : index
    %c256_38 = arith.constant 256 : index
    %59 = vector.load %arg5[%c16_37, %c256_38] : memref<72x512xf32, #tpu.memory_space<vmem>>, vector<8x256xf32>
    tpu.vector_store %arg5[%c16_37, %c256_38], %58 {strides = array<i32>} : memref<72x512xf32, #tpu.memory_space<vmem>>, vector<8x256xf32>,
    %c1_i32_39 = arith.constant 1 : i32
    %60 = tpu.dynamic_rotate %44 by %c1_i32_39 dim 1 : vector<8x256xf32>, i32 -> vector<8x256xf32>
    %c3_40 = arith.constant 3 : index
    %c0_41 = arith.constant 0 : index
    %61 = vector.load %arg3[%c3_40, %c0_41] : memref<9x256xf32, #tpu.memory_space<vmem>>, vector<1x256xf32>
    %62 = vector.broadcast %61 : vector<1x256xf32> to vector<8x256xf32>
    %63 = arith.mulf %60, %62 : vector<8x256xf32>
    %c24_42 = arith.constant 24 : index
    %c256_43 = arith.constant 256 : index
    %64 = vector.load %arg5[%c24_42, %c256_43] : memref<72x512xf32, #tpu.memory_space<vmem>>, vector<8x256xf32>
    tpu.vector_store %arg5[%c24_42, %c256_43], %63 {strides = array<i32>} : memref<72x512xf32, #tpu.memory_space<vmem>>, vector<8x256xf32>,
    %c32_44 = arith.constant 32 : index
    %c256_45 = arith.constant 256 : index
    %65 = vector.load %arg5[%c32_44, %c256_45] : memref<72x512xf32, #tpu.memory_space<vmem>>, vector<8x256xf32>
    tpu.vector_store %arg5[%c32_44, %c256_45], %44 {strides = array<i32>} : memref<72x512xf32, #tpu.memory_space<vmem>>, vector<8x256xf32>,
    %c255_i32_46 = arith.constant 255 : i32
    %66 = tpu.dynamic_rotate %44 by %c255_i32_46 dim 1 : vector<8x256xf32>, i32 -> vector<8x256xf32>
    %c5_47 = arith.constant 5 : index
    %c0_48 = arith.constant 0 : index
    %67 = vector.load %arg3[%c5_47, %c0_48] : memref<9x256xf32, #tpu.memory_space<vmem>>, vector<1x256xf32>
    %68 = vector.broadcast %67 : vector<1x256xf32> to vector<8x256xf32>
    %69 = arith.mulf %66, %68 : vector<8x256xf32>
    %c40_49 = arith.constant 40 : index
    %c256_50 = arith.constant 256 : index
    %70 = vector.load %arg5[%c40_49, %c256_50] : memref<72x512xf32, #tpu.memory_space<vmem>>, vector<8x256xf32>
    tpu.vector_store %arg5[%c40_49, %c256_50], %69 {strides = array<i32>} : memref<72x512xf32, #tpu.memory_space<vmem>>, vector<8x256xf32>,
    %c241_i32_51 = arith.constant 241 : i32
    %71 = tpu.dynamic_rotate %44 by %c241_i32_51 dim 1 : vector<8x256xf32>, i32 -> vector<8x256xf32>
    %c6_52 = arith.constant 6 : index
    %c0_53 = arith.constant 0 : index
    %72 = vector.load %arg3[%c6_52, %c0_53] : memref<9x256xf32, #tpu.memory_space<vmem>>, vector<1x256xf32>
    %73 = vector.broadcast %72 : vector<1x256xf32> to vector<8x256xf32>
    %74 = arith.mulf %71, %73 : vector<8x256xf32>
    %c48_54 = arith.constant 48 : index
    %c256_55 = arith.constant 256 : index
    %75 = vector.load %arg5[%c48_54, %c256_55] : memref<72x512xf32, #tpu.memory_space<vmem>>, vector<8x256xf32>
    tpu.vector_store %arg5[%c48_54, %c256_55], %74 {strides = array<i32>} : memref<72x512xf32, #tpu.memory_space<vmem>>, vector<8x256xf32>,
    %c240_i32_56 = arith.constant 240 : i32
    %76 = tpu.dynamic_rotate %44 by %c240_i32_56 dim 1 : vector<8x256xf32>, i32 -> vector<8x256xf32>
    %c7_57 = arith.constant 7 : index
    %c0_58 = arith.constant 0 : index
    %77 = vector.load %arg3[%c7_57, %c0_58] : memref<9x256xf32, #tpu.memory_space<vmem>>, vector<1x256xf32>
    %78 = vector.broadcast %77 : vector<1x256xf32> to vector<8x256xf32>
    %79 = arith.mulf %76, %78 : vector<8x256xf32>
    %c56_59 = arith.constant 56 : index
    %c256_60 = arith.constant 256 : index
    %80 = vector.load %arg5[%c56_59, %c256_60] : memref<72x512xf32, #tpu.memory_space<vmem>>, vector<8x256xf32>
    tpu.vector_store %arg5[%c56_59, %c256_60], %79 {strides = array<i32>} : memref<72x512xf32, #tpu.memory_space<vmem>>, vector<8x256xf32>,
    %c239_i32_61 = arith.constant 239 : i32
    %81 = tpu.dynamic_rotate %44 by %c239_i32_61 dim 1 : vector<8x256xf32>, i32 -> vector<8x256xf32>
    %c8_62 = arith.constant 8 : index
    %c0_63 = arith.constant 0 : index
    %82 = vector.load %arg3[%c8_62, %c0_63] : memref<9x256xf32, #tpu.memory_space<vmem>>, vector<1x256xf32>
    %83 = vector.broadcast %82 : vector<1x256xf32> to vector<8x256xf32>
    %84 = arith.mulf %81, %83 : vector<8x256xf32>
    %c64_64 = arith.constant 64 : index
    %c256_65 = arith.constant 256 : index
    %85 = vector.load %arg5[%c64_64, %c256_65] : memref<72x512xf32, #tpu.memory_space<vmem>>, vector<8x256xf32>
    tpu.vector_store %arg5[%c64_64, %c256_65], %84 {strides = array<i32>} : memref<72x512xf32, #tpu.memory_space<vmem>>, vector<8x256xf32>,
    %cst = arith.constant 1.000000e+00 : f32
    %86 = vector.broadcast %cst : f32 to vector<1x512xf32>
    %c68 = arith.constant 68 : index
    %c0_66 = arith.constant 0 : index
    %87 = vector.load %arg5[%c68, %c0_66] : memref<72x512xf32, #tpu.memory_space<vmem>>, vector<1x512xf32>
    tpu.vector_store %arg5[%c68, %c0_66], %86 {strides = array<i32>} : memref<72x512xf32, #tpu.memory_space<vmem>>, vector<1x512xf32>,
    %c0_67 = arith.constant 0 : index
    %c0_68 = arith.constant 0 : index
    %88 = vector.load %arg2[%c0_67, %c0_68] : memref<8x72xf32, #tpu.memory_space<vmem>>, vector<8x72xf32>
    %c0_69 = arith.constant 0 : index
    %c0_70 = arith.constant 0 : index
    %89 = vector.load %arg5[%c0_69, %c0_70] : memref<72x512xf32, #tpu.memory_space<vmem>>, vector<72x512xf32>
    %cst_71 = arith.constant dense<0.000000e+00> : vector<8x512xf32>
    %90 = tpu.matmul %88, %89, %cst_71 {dimension_numbers = #tpu.dot_dimension_numbers<[1], [0], [0], [1], [0, 0, 1, 1], [], []>} : vector<8x72xf32>, vector<72x512xf32>, vector<8x512xf32> -> vector<8x512xf32>
    %91 = vector.extract_strided_slice %90 {offsets = [0, 0], sizes = [8, 256], strides = [1, 1]} : vector<8x512xf32> to vector<8x256xf32>
    %c0_72 = arith.constant 0 : index
    %c0_73 = arith.constant 0 : index
    %c0_74 = arith.constant 0 : index
    %92 = vector.load %arg4[%c0_72, %c0_73, %c0_74] : memref<2x8x256xf32, #tpu.memory_space<vmem>>, vector<1x8x256xf32>
    %93 = vector.shape_cast %92 : vector<1x8x256xf32> to vector<8x256xf32>
    %94 = vector.shape_cast %91 : vector<8x256xf32> to vector<1x8x256xf32>
    tpu.vector_store %arg4[%c0_72, %c0_73, %c0_74], %94 {strides = array<i32>} : memref<2x8x256xf32, #tpu.memory_space<vmem>>, vector<1x8x256xf32>,
    %95 = vector.extract_strided_slice %90 {offsets = [0, 256], sizes = [8, 256], strides = [1, 1]} : vector<8x512xf32> to vector<8x256xf32>
    %c1_75 = arith.constant 1 : index
    %c0_76 = arith.constant 0 : index
    %c0_77 = arith.constant 0 : index
    %96 = vector.load %arg4[%c1_75, %c0_76, %c0_77] : memref<2x8x256xf32, #tpu.memory_space<vmem>>, vector<1x8x256xf32>
    %97 = vector.shape_cast %96 : vector<1x8x256xf32> to vector<8x256xf32>
    %98 = vector.shape_cast %95 : vector<8x256xf32> to vector<1x8x256xf32>
    tpu.vector_store %arg4[%c1_75, %c0_76, %c0_77], %98 {strides = array<i32>} : memref<2x8x256xf32, #tpu.memory_space<vmem>>, vector<1x8x256xf32>,
    return
  }
  func.func @transform_0(%arg0: i32) -> (i32, i32, i32) {
    %c0_i32 = arith.constant 0 : i32
    %c0_i32_0 = arith.constant 0 : i32
    %c0_i32_1 = arith.constant 0 : i32
    return %arg0, %c0_i32, %c0_i32_0 : i32, i32, i32
  }
  func.func @transform_1(%arg0: i32) -> (i32, i32) {
    %c0_i32 = arith.constant 0 : i32
    %c0_i32_0 = arith.constant 0 : i32
    %c0_i32_1 = arith.constant 0 : i32
    return %c0_i32, %c0_i32_0 : i32, i32
  }
  func.func @transform_2(%arg0: i32) -> (i32, i32) {
    %c0_i32 = arith.constant 0 : i32
    %c0_i32_0 = arith.constant 0 : i32
    %c0_i32_1 = arith.constant 0 : i32
    return %c0_i32, %c0_i32_0 : i32, i32
  }
  func.func @transform_3(%arg0: i32) -> (i32, i32, i32) {
    %c0_i32 = arith.constant 0 : i32
    %c0_i32_0 = arith.constant 0 : i32
    %c0_i32_1 = arith.constant 0 : i32
    return %arg0, %c0_i32, %c0_i32_0 : i32, i32, i32
  }
}

</mosaic_0001>

<bundles_post_ra>
// kernel: tpu_custom_call.1
= control target key start
LH: loop header
LB: loop body
LE: loop exit
PB: predicated region body
PF: predicated region fallthrough
CT: control target
= control target key end

     0   :  { %s1330_s0 = inlined_call_operand.hbm [shape: f32[4,8,256], index: 0, kind: input, shape index: {}]   ;;  %s1331_s1 = inlined_call_operand.hbm [shape: f32[8,72], index: 1, kind: input, shape index: {}]   ;;  %s1332_s2 = inlined_call_operand.hbm [shape: f32[9,256], index: 2, kind: input, shape index: {}]   ;;  %s1333_s3 = inlined_call_operand.hbm [shape: f32[4,8,256], index: 3, kind: output, shape index: {}]  }
   0x1   :  { %1334 = sst [smem:[#allocation13_spill]] %s1331_s1 }
   0x2   :  { %1335 = sst [smem:[#allocation14_spill]] %s1332_s2 }
   0x3   :  { %8 = vsyncpa [#allocation4], 0 }
   0x4   :  { %10 = vsyncpa [#allocation4 + $0x1], 0 }
   0x5   :  { %11 = vsyncpa [#allocation7], 0 }
   0x6   :  { %12 = vsyncpa [#allocation5], 0 }
   0x7   :  { %14 = vsyncpa [#allocation5 + $0x1], 0  ;;  %s1056_s12 = smov 0   ;;  %s1058_s13 = smov 0  }
   0x8   :  { %s1060_s14 = smov 0   ;;  %s1062_s15 = smov 0  }
   0x9 LB: > { %s1077_s16 = sadd.s32 4294967295, %s1020_s15   ;;  %s749_s17 = sadd.s32 4294967294, %s1020_s15   ;;  %s1020_s15 = sphi %s1062_s15, %s1348_s15   ;;  %s1016_s14 = sphi %s1060_s14, %s1347_s14   ;;  %s1012_s13 = sphi %s1058_s13, %s1346_s13   ;;  %s1008_s12 = sphi %s1056_s12, %s1345_s12  }
   0xa   : > { %s1081_s18 = sadd.s32 1, %s1020_s15   ;;  %s27_s19 = sadd.s32 1, %s1016_s14 }
   0xb   : > { %s24_s20 = ssub.s32 %s1020_s15, %s1081_s18  ;;  %p34_p0 = scmp.ne.s32.totalorder %s1016_s14, %s1012_s13 }
   0xc   : > { %p25_p1 = scmp.eq.s32.totalorder %s24_s20, 0  ;;  %p35_p2 = scmp.eq.s32.totalorder %s1020_s15, 0 }
   0xd   : > { %p40_p3 = scmp.ne.s32.totalorder %s1012_s13, %s1008_s12  ;;  %p41_p4 = scmp.eq.s32.totalorder %s1077_s16, 0 }
   0xe   : > { %s1093_s21 = scalar_select %p25_p1, %s1016_s14, %s27_s19  }
   0xf   : > { %p1095_p5 = por %p35_p2, %p34_p0  ;;  %p1101_p6 = por %p41_p4, %p40_p3 }
  0x10   : > { %p106_p7 = scmp.eq.s32.totalorder %s1077_s16, 1  ;;  %p112_p8 = scmp.eq.s32.totalorder %s749_s17, 1 }
  0x11   : > { %p750_p9 = scmp.ge.s32.totalorder %s1020_s15, 1  ;;  %p119_p10 = scmp.lt.s32.totalorder %s1020_s15, 3 }
  0x12   : > { %p1108_p11 = por %p106_p7, %p34_p0  ;;  %p1112_p12 = por %p112_p8, %p40_p3 }
  0x13   : > { %p1116_p13 = pnand %p750_p9, %p119_p10  ;;  %s1341_s1 = sld [smem:[#allocation13_spill]] }
  0x14   : > { %s1022_s30 = smov [#allocation6]   ;;  %p810_p3 = scmp.lt.s32.totalorder %s1020_s15, 2 }
  0x15   : > { %p793_p1 = pneg %p1116_p13  ;;  %s133_s4 = sshll.u32 %s1022_s30, 4  ;;  %s134_s4 = int_to_ptr.vmem [resolvable:$true] %s133_s4 }
  0x16   : > { %s1342_s2 = sld [smem:[#allocation14_spill]]  ;;  %p1134_p7 = pnand %p810_p3, %p1095_p5 }
  0x17   : > { %p794_p2 = pnand %p793_p1, %p41_p4  ;;  %s1023_s9 = smov [#allocation8]  }
  0x18   : > { %s144_s10 = sshll.u32 %s1023_s9, 4  ;;  %s158_s11 = sand.u32 1, %s1016_s14   ;;  %s145_s10 = int_to_ptr.vmem [resolvable:$true] %s144_s10 }
  0x19   : > { %s131_s29 = sshll.u32 %s1341_s1, 4  ;;  %s1024_s17 = smov 256   ;;  %s132_s29 = int_to_ptr.hbm [resolvable:$true] %s131_s29 }
  0x1a   : > { %796 = dma.hbm_to_vmem [thread:$0]  (!%p794_p2), %s132_s29, 128, %s134_s4, [#allocation7]  }
  0x1b   : > { %s1025_s19 = smov 16   ;;  %s754_s20 = sshll.u32 %s158_s11, 5 }
  0x1c   : > { %s142_s7 = sshll.u32 %s1342_s2, 4  ;;  %s778_s27 = sshll.u32 %s1020_s15, 5  ;;  %s143_s7 = int_to_ptr.hbm [resolvable:$true] %s142_s7 }
  0x1d   : > { %799 = dma.hbm_to_vmem [thread:$0]  (!%p794_p2), %s143_s7, 512, %s145_s10, [#allocation7], %s1024_s17, %s1024_s17, %s1025_s19  }
  0x1e   : > { %s168_s5 = scalar_lea.hbm %s1330_s0, %s778_s27  ;;  %s162_s29 = scalar_lea.vmem [#allocation3], %s754_s20 }
  0x1f   : > { %s171_s22 = sshll.u32 %s162_s29, 4  ;;  %s169_s4 = sshll.u32 %s168_s5, 4  ;;  %s172_s22 = int_to_ptr.vmem [resolvable:$true] %s171_s22  ;;  %s170_s4 = int_to_ptr.hbm [resolvable:$true] %s169_s4 }
  0x20   : > { %s159_s6 = scalar_lea.sflag [#allocation4], %s158_s11  ;;  %s920_s1 = sshra.s32 %s170_s4, 4  ;;  %s921_s1 = int_to_ptr.hbm [resolvable:$true] %s920_s1 }
  0x21   : > { %s922_s9 = scalar_lea.hbm %s921_s1, 32  ;;  %p924_p8 = pneg %p1134_p7 }
  0x22   : > { %p923_p5 = scmp.ne.s32.totalorder %s921_s1, %s922_s9  ;;  %s927_s2 = scalar_lea.hbm %s1330_s0, 64 }
  0x23   : > { %p928_p1 = scmp.lt.s32.totalorder %s921_s1, %s1330_s0  ;;  %p929_p2 = scmp.lt.s32.totalorder %s927_s2, %s922_s9 }
  0x24   : > { %p925_p9 = pnand %p924_p8, %p923_p5 }
  0x25   : > { %p930_p3 = por %p929_p2, %p928_p1 }
  0x26   : > { %p926_p10 = pneg %p925_p9 }
  0x28   : > { %p931_p0 = pnand %p930_p3, %p926_p10 }
  0x2a   : > { %934 = shalt.err (!%p931_p0)
}
  0x2b   : > { %803 = dma.hbm_to_vmem [thread:$0]  (!%p1134_p7), %s170_s4, 512, %s172_s22, %s159_s6, %s1024_s17, %s1024_s17, %s1025_s19  }
  0x2c   : > { %183 = sbr.rel (%p1116_p13) target bundleno = 383 (0x17f), region = 32  ;;  %s1156_s11 = sand.u32 (!%p1116_p13), 1, %s1012_s13  }
  0x2d   : > { %s759_s20 = sshll.u32 (!%p1116_p13), %s1156_s11, 5  ;;  %s186_s30 = scalar_lea.sflag (!%p1116_p13), [#allocation4], %s1156_s11 }
  0x2e   : > { %s189_s1 = scalar_lea.vmem (!%p1116_p13), [#allocation3], %s759_s20 }
  0x31   : > { %995 = dma.done.wait (%p1101_p6), %s186_s30, 512  }
  0x32   : > { %997 = vsyncadd (%p1101_p6), %s186_s30, 4294966784 }
  0x33   : > { %999 = dma.done.wait (%p41_p4), [#allocation7], 640  }
  0x34   : > { %1001 = vsyncadd (%p41_p4), [#allocation7], 4294966656  ;;  %v1170_v0 = vld [vmem:[%s189_s1 + $0x10] sm:$0xff]  ;;  %v1172_v1 = vld [vmem:[%s189_s1] sm:$0xff]  ;;  %s1026_s2 = smov 111   ;;  %s1027_s26 = smov 112   ;;  %v231_v4 = vlaneseq }
  0x35   : > { %491 = vrot.lane.b32.xlu1 %v1170_v0, %s1026_s2  ;;  %356 = vrot.lane.b32.xlu0 %v1172_v1, %s1026_s2  ;;  %v1176_v2 = vld [vmem:[%s189_s1 + $0x18] sm:$0xff]  ;;  %v1179_v3 = vld [vmem:[%s189_s1 + $0x8] sm:$0xff]  ;;  %s1028_s23 = smov 113   ;;  %s1029_s8 = smov 127   ;;  %v1034_v38 = vmov 1.0   ;;  %vm551_vm9 = vcmask 588800  }
  0x36   : > { %475 = vrot.lane.b32.xlu2 %v1170_v0, %s1027_s26  ;;  %s1030_s17 = smov 1   ;;  %s1031_s19 = smov 15   ;;  %v1214_v6 = vand.u32 127, %v231_v4  ;;  %v481_v7 = vld [vmem:[#allocation8 + $0x7] ss:$8 sm:$0x3] }
  0x37   : > { %s1032_s5 = smov 16   ;;  %s1033_s29 = smov 17   ;;  %v483_v8 = vperm.slane %v481_v7, 0  ;;  %v484_v9 = vperm.slane %v481_v7, 1  ;;  %vm509_vm2 = vcmp.lt.s32.totalorder %v231_v4, 512 }
  0x38   : > { %vm342_vm0 = vcmp.lt.s32.totalorder %v1214_v6, 112  ;;  %v497_v18 = vld [vmem:[#allocation8 + $0x10] ss:$8 sm:$0x3]  ;;  %vm360_vm1 = vcmp.lt.s32.totalorder %v1214_v6, 111  ;;  %vm324_vm3 = vcmp.lt.s32.totalorder %v1214_v6, 113 }
  0x39   : > { %v364_v19 = vld [vmem:[#allocation8 + $0x10] ss:$8 sm:$0x3]  ;;  %v499_v20 = vperm.slane %v497_v18, 0  ;;  %v500_v21 = vperm.slane %v497_v18, 1  ;;  %vm306_vm4 = vcmp.lt.s32.totalorder %v1214_v6, 127 }
  0x3a   : > { %v366_v22 = vperm.slane %v364_v19, 0  ;;  %v367_v23 = vperm.slane %v364_v19, 1  ;;  %v465_v35 = vld [vmem:[#allocation8 + $0x6] ss:$8 sm:$0x3]  ;;  %vm286_vm5 = vcmp.lt.s32.totalorder %v1214_v6, 1 }
  0x3b   : > { %v467_v36 = vperm.slane %v465_v35, 0  ;;  %v468_v37 = vperm.slane %v465_v35, 1  ;;  %v346_v45 = vld [vmem:[#allocation8 + $0x7] ss:$8 sm:$0x3]  ;;  %vm268_vm6 = vcmp.lt.s32.totalorder %v1214_v6, 15 }
  0x3c   : > { %v449_v46 = vld [vmem:[#allocation8 + $0x5] ss:$8 sm:$0x3]  ;;  %v348_v48 = vperm.slane %v346_v45, 0  ;;  %v349_v49 = vperm.slane %v346_v45, 1  ;;  %vm250_vm7 = vcmp.lt.s32.totalorder %v1214_v6, 16 }
  0x3d   : > { %493 = vrot.lane.b32.xlu1 %v1176_v2, %s1026_s2  ;;  %358 = vrot.lane.b32.xlu0 %v1179_v3, %s1026_s2  ;;  %v451_v50 = vperm.slane %v449_v46, 0  ;;  %v452_v54 = vperm.slane %v449_v46, 1  ;;  %v328_v7 = vld [vmem:[#allocation8 + $0x6] ss:$8 sm:$0x3]  ;;  %vm233_vm8 = vcmp.lt.s32.totalorder %v1214_v6, 17 }
  0x3e   : > { %477 = vrot.lane.b32.xlu2 %v1176_v2, %s1027_s26  ;;  %v431_v18 = vld [vmem:[#allocation8 + $0x3] ss:$8 sm:$0x3]  ;;  %s222_s22 = scalar_lea.vmem [#allocation9], %s759_s20  ;;  %s780_s4 = sshll.u32 %s1077_s16, 5 }
  0x3f   : > { %s653_s7 = scalar_lea.hbm %s1333_s3, %s780_s4  ;;  %s654_s10 = sshll.u32 %s222_s22, 4  ;;  %s655_s10 = int_to_ptr.vmem [resolvable:$true] %s654_s10 }
  0x40   : > { %s656_s28 = sshll.u32 %s653_s7, 4  ;;  %s641_s27 = scalar_lea.sflag [#allocation5], %s1156_s11  ;;  %s657_s28 = int_to_ptr.hbm [resolvable:$true] %s656_s28 }
  0x41   : > { %s964_s30 = sshra.s32 %s657_s28, 4  ;;  %s970_s2 = scalar_lea.hbm %s1333_s3, 64  ;;  %s965_s30 = int_to_ptr.hbm [resolvable:$true] %s964_s30 }
  0x42   : > { %s966_s20 = scalar_lea.hbm %s965_s30, 32  ;;  %p971_p0 = scmp.lt.s32.totalorder %s965_s30, %s1333_s3 }
  0x43   : > { %p967_p4 = scmp.ne.s32.totalorder %s965_s30, %s966_s20  ;;  %p972_p7 = scmp.lt.s32.totalorder %s970_s2, %s966_s20 }
  0x45   : > { %461 = vrot.lane.b32.xlu1 %v1176_v2, %s1028_s23  ;;  %459 = vrot.lane.b32.xlu0 %v1170_v0, %s1028_s23  ;;  %p968_p6 = pnand %p967_p4, %p1108_p11  ;;  %p973_p5 = por %p972_p7, %p971_p0 }
  0x46   : > { %443 = vrot.lane.b32.xlu2 %v1170_v0, %s1029_s8 }
  0x47   : > { %p969_p13 = pneg %p968_p6 }
  0x49   : > { %p974_p8 = pnand %p973_p5, %p969_p13 }
  0x4d   : > { %338 = vrot.lane.b32.xlu1 %v1172_v1, %s1027_s26  ;;  %445 = vrot.lane.b32.xlu0 %v1176_v2, %s1029_s8 }
  0x4e   : > { %340 = vrot.lane.b32.xlu2 %v1179_v3, %s1027_s26 }
  0x55   : > { %322 = vrot.lane.b32.xlu1 %v1179_v3, %s1028_s23  ;;  %320 = vrot.lane.b32.xlu0 %v1172_v1, %s1028_s23 }
  0x56   : > { %425 = vrot.lane.b32.xlu2 %v1170_v0, %s1030_s17 }
  0x5d   : > { %302 = vrot.lane.b32.xlu1 %v1172_v1, %s1029_s8  ;;  %427 = vrot.lane.b32.xlu0 %v1176_v2, %s1030_s17 }
  0x5e   : > { %304 = vrot.lane.b32.xlu2 %v1179_v3, %s1029_s8 }
  0x65   : > { %411 = vrot.lane.b32.xlu1 %v1176_v2, %s1031_s19  ;;  %409 = vrot.lane.b32.xlu0 %v1170_v0, %s1031_s19 }
  0x66   : > { %393 = vrot.lane.b32.xlu2 %v1170_v0, %s1032_s5 }
  0x6d   : > { %282 = vrot.lane.b32.xlu1 %v1172_v1, %s1030_s17  ;;  %395 = vrot.lane.b32.xlu0 %v1176_v2, %s1032_s5 }
  0x6e   : > { %284 = vrot.lane.b32.xlu2 %v1179_v3, %s1030_s17 }
  0x75   : > { %379 = vrot.lane.b32.xlu1 %v1176_v2, %s1033_s29  ;;  %377 = vrot.lane.b32.xlu0 %v1170_v0, %s1033_s29 }
  0x76   : > { %264 = vrot.lane.b32.xlu2 %v1172_v1, %s1031_s19 }
  0x7d   : > { %246 = vrot.lane.b32.xlu1 %v1172_v1, %s1032_s5  ;;  %266 = vrot.lane.b32.xlu0 %v1179_v3, %s1031_s19 }
  0x7e   : > { %248 = vrot.lane.b32.xlu2 %v1179_v3, %s1032_s5 }
  0x85   : > { %229 = vrot.lane.b32.xlu1 %v1179_v3, %s1033_s29  ;;  %227 = vrot.lane.b32.xlu0 %v1172_v1, %s1033_s29 }
  0x90   : > { %v476_v5 = vpop.permute.xlu2 %475 }
  0x98   : > { %v478_v10 = vpop.permute.xlu2 %477 }
  0x99   : > { %v479_v11 = vsel %vm342_vm0, %v476_v5, %v478_v10  ;;  %v480_v12 = vsel %vm342_vm0, %v478_v10, %v476_v5  ;;  %v331_v10 = vperm.slane %v328_v7, 1 }
  0x9a   : > { %v1221_v13 = vmul.f32 %v483_v8, %v479_v11  ;;  %v1223_v14 = vmul.f32 %v484_v9, %v480_v12  ;;  %v330_v9 = vperm.slane %v328_v7, 0  ;;  %v514_v7 = vld [vmem:[#allocation6] sm:$0xff] }
  0xa0   : > { %v444_v15 = vpop.permute.xlu2 %443 }
  0xa7   : > { %v492_v16 = vpop.permute.xlu1 %491  ;;  %v357_v17 = vpop.permute.xlu0 %356 }
  0xa8   : > { %v341_v30 = vpop.permute.xlu2 %340 }
  0xaf   : > { %v494_v24 = vpop.permute.xlu1 %493  ;;  %v359_v25 = vpop.permute.xlu0 %358 }
  0xb0   : > { %v495_v26 = vsel %vm360_vm1, %v492_v16, %v494_v24  ;;  %v496_v27 = vsel %vm360_vm1, %v494_v24, %v492_v16  ;;  %v361_v28 = vsel %vm360_vm1, %v357_v17, %v359_v25  ;;  %v362_v29 = vsel %vm360_vm1, %v359_v25, %v357_v17  ;;  %v426_v47 = vpop.permute.xlu2 %425  ;;  %v310_v17 = vld [vmem:[#allocation8 + $0x5] ss:$8 sm:$0x3] }
  0xb1   : > { %v503_v31 = vmul.f32 %v499_v20, %v495_v26  ;;  %v504_v32 = vmul.f32 %v500_v21, %v496_v27  ;;  %v370_v33 = vmul.f32 %v366_v22, %v361_v28  ;;  %v371_v34 = vmul.f32 %v367_v23, %v362_v29 }
  0xb2   : > { %v312_v19 = vperm.slane %v310_v17, 0  ;;  %v313_v20 = vperm.slane %v310_v17, 1  ;;  %v433_v21 = vperm.slane %v431_v18, 0  ;;  %v434_v22 = vperm.slane %v431_v18, 1 }
  0xb3   : > { %505 = vst [vmem:[#allocation2 + $0x110] sm:$0xff] %v503_v31 }
  0xb4   : > { %506 = vst [vmem:[#allocation2 + $0x118] sm:$0xff] %v504_v32  ;;  %v415_v32 = vld [vmem:[#allocation8 + $0x2] ss:$8 sm:$0x3] }
  0xb5   : > { %372 = vst [vmem:[#allocation2 + $0x100] sm:$0xff] %v370_v33  ;;  %v417_v33 = vperm.slane %v415_v32, 0 }
  0xb6   : > { %373 = vst [vmem:[#allocation2 + $0x108] sm:$0xff] %v371_v34  ;;  %v418_v34 = vperm.slane %v415_v32, 1 }
  0xb7   : > { %512 = vst.msk [vmem:[#allocation2 + $0x104] ss:$8 sm:$0xf] %vm509_vm2, %v1034_v38  ;;  %v462_v39 = vpop.permute.xlu1 %461  ;;  %v460_v40 = vpop.permute.xlu0 %459 }
  0xb8   : > { %v463_v41 = vsel %vm324_vm3, %v460_v40, %v462_v39  ;;  %v464_v42 = vsel %vm324_vm3, %v462_v39, %v460_v40  ;;  %v305_v8 = vpop.permute.xlu2 %304 }
  0xb9   : > { %v471_v43 = vmul.f32 %v467_v36, %v463_v41  ;;  %v472_v44 = vmul.f32 %v468_v37, %v464_v42  ;;  %v290_v42 = vld [vmem:[#allocation8 + $0x3] ss:$8 sm:$0x3] }
  0xba   : > { %v293_v45 = vperm.slane %v290_v42, 1 }
  0xbe   : > { %v547_v51 = vld [vmem:[#allocation2 + $0x100] sm:$0xff]  ;;  %v548_v52 = vld [vmem:[#allocation2 + $0x108] sm:$0xff]  ;;  %v549_v53 = vld [vmem:[#allocation2 + $0x110] sm:$0xff] }
  0xbf   : > { %562 = vmatpush.msra.mxu0 %v547_v51  ;;  %582 = vmatpush.msra.mxu1 %v548_v52  ;;  %v550_v55 = vld [vmem:[#allocation2 + $0x118] sm:$0xff]  ;;  %v339_v56 = vpop.permute.xlu1 %338  ;;  %v446_v57 = vpop.permute.xlu0 %445 }
  0xc0   : > { %602 = vmatpush.msra.mxu2 %v549_v53  ;;  %622 = vmatpush.msra.mxu3 %v550_v55  ;;  %v343_v58 = vsel %vm342_vm0, %v339_v56, %v341_v30  ;;  %v344_v59 = vsel %vm342_vm0, %v341_v30, %v339_v56  ;;  %v447_v60 = vsel %vm306_vm4, %v444_v15, %v446_v57  ;;  %v394_v23 = vpop.permute.xlu2 %393  ;;  %v383_v56 = vld [vmem:[#allocation8] ss:$8 sm:$0x3] }
  0xc1   : > { %v352_v61 = vmul.f32 %v348_v48, %v343_v58  ;;  %v353_v62 = vmul.f32 %v349_v49, %v344_v59  ;;  %v448_v63 = vsel %vm306_vm4, %v446_v57, %v444_v15  ;;  %v455_v4 = vmul.f32 %v451_v50, %v447_v60 }
  0xc2   : > { %603 = vmatpush.msra.mxu2 %v1221_v13  ;;  %623 = vmatpush.msra.mxu3 %v1223_v14  ;;  %v456_v5 = vmul.f32 %v452_v54, %v448_v63  ;;  %v385_v58 = vperm.slane %v383_v56, 0  ;;  %v386_v59 = vperm.slane %v383_v56, 1 }
  0xc3   : > { %563 = vmatpush.msra.mxu0 %v352_v61  ;;  %583 = vmatpush.msra.mxu1 %v353_v62 }
  0xc4   : > { %604 = vmatpush.msra.mxu2 %v471_v43  ;;  %624 = vmatpush.msra.mxu3 %v472_v44  ;;  %v399_v43 = vld [vmem:[#allocation8 + $0x1] ss:$8 sm:$0x3]  ;;  %v292_v44 = vperm.slane %v290_v42, 0 }
  0xc6   : > { %605 = vmatpush.msra.mxu2 %v455_v4  ;;  %625 = vmatpush.msra.mxu3 %v456_v5 }
  0xc7   : > { %v323_v11 = vpop.permute.xlu1 %322  ;;  %v321_v12 = vpop.permute.xlu0 %320 }
  0xc8   : > { %v325_v15 = vsel %vm324_vm3, %v321_v12, %v323_v11  ;;  %v326_v13 = vsel %vm324_vm3, %v323_v11, %v321_v12  ;;  %606 = vmatpush.msra.mxu2 %v1170_v0  ;;  %626 = vmatpush.msra.mxu3 %v1176_v2  ;;  %v285_v41 = vpop.permute.xlu2 %284 }
  0xc9   : > { %v334_v14 = vmul.f32 %v330_v9, %v325_v15  ;;  %v335_v16 = vmul.f32 %v331_v10, %v326_v13  ;;  %v272_v9 = vld [vmem:[#allocation8 + $0x2] ss:$8 sm:$0x3] }
  0xca   : > { %v274_v15 = vperm.slane %v272_v9, 0  ;;  %v275_v13 = vperm.slane %v272_v9, 1 }
  0xcb   : > { %564 = vmatpush.msra.mxu0 %v334_v14  ;;  %584 = vmatpush.msra.mxu1 %v335_v16 }
  0xcf   : > { %v303_v24 = vpop.permute.xlu1 %302  ;;  %v428_v25 = vpop.permute.xlu0 %427 }
  0xd0   : > { %v307_v0 = vsel %vm306_vm4, %v303_v24, %v305_v8  ;;  %v308_v2 = vsel %vm306_vm4, %v305_v8, %v303_v24  ;;  %v429_v26 = vsel %vm286_vm5, %v426_v47, %v428_v25  ;;  %v430_v27 = vsel %vm286_vm5, %v428_v25, %v426_v47  ;;  %v265_v57 = vpop.permute.xlu2 %264  ;;  %v254_v8 = vld [vmem:[#allocation8 + $0x1] ss:$8 sm:$0x3]  ;;  %v236_v25 = vld [vmem:[#allocation8] ss:$8 sm:$0x3] }
  0xd1   : > { %v316_v28 = vmul.f32 %v312_v19, %v307_v0  ;;  %v317_v29 = vmul.f32 %v313_v20, %v308_v2  ;;  %v437_v30 = vmul.f32 %v433_v21, %v430_v27  ;;  %v438_v31 = vmul.f32 %v434_v22, %v429_v26 }
  0xd2   : > { %v256_v11 = vperm.slane %v254_v8, 0  ;;  %v257_v12 = vperm.slane %v254_v8, 1  ;;  %v238_v0 = vperm.slane %v236_v25, 0  ;;  %v239_v2 = vperm.slane %v236_v25, 1 }
  0xd3   : > { %565 = vmatpush.msra.mxu0 %v316_v28  ;;  %585 = vmatpush.msra.mxu1 %v317_v29 }
  0xd4   : > { %607 = vmatpush.msra.mxu2 %v437_v30  ;;  %627 = vmatpush.msra.mxu3 %v438_v31 }
  0xd5   : > { %566 = vmatpush.msra.mxu0 %v1172_v1  ;;  %586 = vmatpush.msra.mxu1 %v1179_v3  ;;  %v401_v1 = vperm.slane %v399_v43, 0  ;;  %v402_v3 = vperm.slane %v399_v43, 1 }
  0xd7   : > { %v412_v35 = vpop.permute.xlu1 %411  ;;  %v410_v36 = vpop.permute.xlu0 %409 }
  0xd8   : > { %v413_v37 = vsel %vm268_vm6, %v410_v36, %v412_v35  ;;  %v414_v38 = vsel %vm268_vm6, %v412_v35, %v410_v36  ;;  %v249_v10 = vpop.permute.xlu2 %248 }
  0xd9   : > { %v421_v39 = vmul.f32 %v417_v33, %v414_v38  ;;  %v422_v40 = vmul.f32 %v418_v34, %v413_v37 }
  0xdb   : > { %608 = vmatpush.msra.mxu2 %v421_v39  ;;  %628 = vmatpush.msra.mxu3 %v422_v40 }
  0xdf   : > { %v283_v46 = vpop.permute.xlu1 %282  ;;  %v396_v47 = vpop.permute.xlu0 %395 }
  0xe0   : > { %v287_v48 = vsel %vm286_vm5, %v283_v46, %v285_v41  ;;  %v288_v49 = vsel %vm286_vm5, %v285_v41, %v283_v46  ;;  %v397_v50 = vsel %vm250_vm7, %v394_v23, %v396_v47  ;;  %v398_v51 = vsel %vm250_vm7, %v396_v47, %v394_v23 }
  0xe1   : > { %v296_v52 = vmul.f32 %v292_v44, %v288_v49  ;;  %v297_v53 = vmul.f32 %v293_v45, %v287_v48  ;;  %v405_v54 = vmul.f32 %v401_v1, %v398_v51  ;;  %v406_v55 = vmul.f32 %v402_v3, %v397_v50 }
  0xe3   : > { %567 = vmatpush.msra.mxu0 %v296_v52  ;;  %587 = vmatpush.msra.mxu1 %v297_v53 }
  0xe4   : > { %609 = vmatpush.msra.mxu2 %v405_v54  ;;  %629 = vmatpush.msra.mxu3 %v406_v55 }
  0xe7   : > { %v380_v60 = vpop.permute.xlu1 %379  ;;  %v378_v61 = vpop.permute.xlu0 %377 }
  0xe8   : > { %v381_v62 = vsel %vm233_vm8, %v378_v61, %v380_v60  ;;  %v382_v63 = vsel %vm233_vm8, %v380_v60, %v378_v61 }
  0xe9   : > { %v389_v4 = vmul.f32 %v385_v58, %v382_v63  ;;  %v390_v5 = vmul.f32 %v386_v59, %v381_v62 }
  0xeb   : > { %610 = vmatpush.msra.mxu2 %v389_v4  ;;  %630 = vmatpush.msra.mxu3 %v390_v5 }
  0xec   : > { %767 = vmatmul.msk.f32.vlgmr.msra.gmra.mxu2 %vm551_vm9, %v514_v7  ;;  %768 = vmatmul.msk.f32.vlgmr.msra.gmra.mxu3 %vm551_vm9, %v514_v7 }
  0xef   : > { %v247_v14 = vpop.permute.xlu1 %246  ;;  %v267_v16 = vpop.permute.xlu0 %266 }
  0xf0   : > { %v251_v17 = vsel %vm250_vm7, %v247_v14, %v249_v10  ;;  %v252_v18 = vsel %vm250_vm7, %v249_v10, %v247_v14  ;;  %v269_v19 = vsel %vm268_vm6, %v265_v57, %v267_v16  ;;  %v270_v20 = vsel %vm268_vm6, %v267_v16, %v265_v57 }
  0xf1   : > { %v260_v21 = vmul.f32 %v256_v11, %v252_v18  ;;  %v261_v22 = vmul.f32 %v257_v12, %v251_v17  ;;  %v278_v23 = vmul.f32 %v274_v15, %v270_v20  ;;  %v279_v24 = vmul.f32 %v275_v13, %v269_v19 }
  0xf3   : > { %568 = vmatpush.msra.mxu0 %v278_v23  ;;  %588 = vmatpush.msra.mxu1 %v279_v24 }
  0xf5   : > { %569 = vmatpush.msra.mxu0 %v260_v21  ;;  %589 = vmatpush.msra.mxu1 %v261_v22 }
  0xf7   : > { %v230_v26 = vpop.permute.xlu1 %229  ;;  %v228_v27 = vpop.permute.xlu0 %227 }
  0xf8   : > { %v234_v28 = vsel %vm233_vm8, %v228_v27, %v230_v26  ;;  %v235_v29 = vsel %vm233_vm8, %v230_v26, %v228_v27 }
  0xf9   : > { %v242_v30 = vmul.f32 %v238_v0, %v235_v29  ;;  %v243_v31 = vmul.f32 %v239_v2, %v234_v28 }
  0xfb   : > { %570 = vmatpush.msra.mxu0 %v242_v30  ;;  %590 = vmatpush.msra.mxu1 %v243_v31 }
  0xfc   : > { %765 = vmatmul.msk.f32.vlgmr.msra.gmra.mxu0 %vm551_vm9, %v514_v7  ;;  %766 = vmatmul.msk.f32.vlgmr.msra.gmra.mxu1 %vm551_vm9, %v514_v7 }
 0x16f   : > { %v612_v32 = vpop.f32.mrf.mxu2  ;;  %v632_v33 = vpop.f32.mrf.mxu3 }
 0x170   : > { %769 = vst [vmem:[%s222_s22 + $0x10] sm:$0xff] %v612_v32 }
 0x171   : > { %770 = vst [vmem:[%s222_s22 + $0x18] sm:$0xff] %v632_v33 }
 0x179   : > { %v572_v6 = vpop.f32.mrf.mxu0  ;;  %v592_v34 = vpop.f32.mrf.mxu1 }
 0x17a   : > { %635 = vst [vmem:[%s222_s22] sm:$0xff] %v572_v6 }
 0x17b   : > { %636 = vst [vmem:[%s222_s22 + $0x8] sm:$0xff] %v592_v34 }
 0x17c   : > { %977 = shalt.err (!%p974_p8)
}
 0x17d   : > { %s1035_s11 = smov 256  }
 0x17e   : > { %791 = dma.vmem_to_hbm [thread:$0]  (%p1108_p11), %s655_s10, 512, %s657_s28, %s641_s27, %s1035_s11, %s1035_s11, %s1032_s5  }
 0x17f PF: > { %s671_s8 = sand.u32 1, %s1008_s12   ;;  %p1344_p9 = scmp.ge.s32.totalorder %s1020_s15, 2 }
 0x180   : > { %s672_s17 = scalar_lea.sflag [#allocation5], %s671_s8 }
 0x181   : > { %p805_p10 = pnand %p1344_p9, %p1112_p12 }
 0x183   : > { %p806_p1 = pneg %p805_p10 }
 0x185   : > { %1003 = dma.done.wait (%p806_p1), %s672_s17, 512  }
 0x186   : > { %1005 = vsyncadd (%p806_p1), %s672_s17, 4294966784  ;;  %p17_p2 = scmp.ge.s32.totalorder %s1081_s18, 4   ;;  %s1345_s12 = smov %s1012_s13 }
 0x187   : > { %s1346_s13 = smov %s1016_s14  ;;  %s1347_s14 = smov %s1093_s21 }
 0x188   : > { %s1348_s15 = smov %s1081_s18  ;;  %19 = sbr.rel (!%p17_p2) target bundleno = 9 (0x9), region = 95 }
 0x18d   :  { %678 = vsyncpa [#allocation4], 1 }
 0x18e   :  { %680 = vsyncpa [#allocation4 + $0x1], 1 }
 0x18f   :  { %681 = vsyncpa [#allocation7], 1 }
 0x190   :  { %682 = vsyncpa [#allocation5], 1 }
 0x191   :  { %684 = vsyncpa [#allocation5 + $0x1], 1 }

</bundles_post_ra>
